<compile_context>
chip_gen: v6e
topology: v6e:2x2x1
jax: 0.10.0
libtpu: 0.0.40
codegen_flags: <defaults>
</compile_context>

<pallas_src>
import jax
import jax.numpy as jnp
from jax import lax
from jax.experimental import pallas as pl
from jax.experimental.pallas import tpu as pltpu


def _round_up(x: int, m: int) -> int:
    return ((x + m - 1) // m) * m


def _min_sublane(dtype) -> int:
    # 8 rows for 32-bit dtypes, 16 for 16-bit, 32 for 8-bit (packed sublanes).
    return max(8, 32 // jnp.dtype(dtype).itemsize)


# ----------------------------------------------------------------------------
# Kernels
# ----------------------------------------------------------------------------
def _embed_abs_kernel(idx_ref, w_ref, out_ref):
    # idx_ref: (TILE_N, 1) int32 row ids for this tile (VMEM).
    # w_ref:   (V, D) embedding table, resident in VMEM (constant block index).
    # out_ref: (TILE_N, D) output tile.
    v = w_ref.shape[0]
    idx = idx_ref[...]                                     # (TILE_N, 1)
    iota = lax.broadcasted_iota(jnp.int32, (1, v), 1)      # (1, V) -- tiny
    onehot = (idx == iota).astype(w_ref.dtype)             # (TILE_N, V), no select
    # One-hot row selection on the MXU; HIGHEST keeps f32 rows exact.
    gathered = jnp.dot(onehot, w_ref[...],
                       preferred_element_type=jnp.float32,
                       precision=lax.Precision.HIGHEST)
    out_ref[...] = jnp.abs(gathered).astype(out_ref.dtype)


def _row_gather_abs_kernel(idx_pref_ref, w_row_ref, out_ref):
    # idx_pref_ref: scalar-prefetched indices (SMEM); consumed by the index_maps.
    del idx_pref_ref
    out_ref[...] = jnp.abs(w_row_ref[...]).astype(out_ref.dtype)


# ----------------------------------------------------------------------------
# Tile selection / wrapper
# ----------------------------------------------------------------------------
def _pick_tile_n(n: int, v: int, d: int, dtype) -> tuple[int, int]:
    itemsize = jnp.dtype(dtype).itemsize
    min_sub = _min_sublane(dtype)
    lane_d = max(_round_up(d, 128), 128)
    lane_v = max(_round_up(v, 128), 128)
    # Per-output-row VMEM cost of one grid step: 2 out buffers, 2 lane-padded
    # idx buffers, onehot + iota f32 intermediates (may spill to VMEM).
    per_row = 2 * lane_d * itemsize + 2 * 128 * 4 + 2 * lane_v * 4
    budget = 8 << 20  # per-step working-set budget
    cap = (budget // per_row) // min_sub * min_sub
    # TODO(synk): tune the cap per generation (~512 v5e / ~1024 v6e / ~2048 v7x).
    cap = max(min_sub, min(2048, cap))
    tile_n = min(cap, _round_up(n, min_sub))
    # Keep >= 2 grid steps when possible so v7x can shard across both TCs
    # (no-op on single-TC v5e/v6e).
    if _round_up(n, tile_n) == tile_n and tile_n >= 2 * min_sub:
        tile_n = _round_up(tile_n // 2, min_sub)
    return tile_n, min_sub


def _gather_abs(idx_flat: jax.Array, weights: jax.Array) -> jax.Array:
    """out[i, :] = |weights[idx_flat[i], :]| via a tiled Pallas gather."""
    n = int(idx_flat.shape[0])
    v, d = weights.shape
    if n == 0:  # empty slice: nothing to launch
        return jnp.zeros((0, d), weights.dtype)

    itemsize = jnp.dtype(weights.dtype).itemsize
    tile_n, min_sub = _pick_tile_n(n, v, d, weights.dtype)

    lane_d = max(_round_up(d, 128), 128)
    lane_v = max(_round_up(v, 128), 128)
    table_bytes = v * lane_d * itemsize
    # Conservative accounting (2 table buffers in case Buffered(1) is not
    # honored, 2 out tiles, 2 lane-padded idx tiles, onehot/iota, headroom).
    vmem_bytes = (2 * table_bytes
                  + 2 * tile_n * lane_d * itemsize
                  + 2 * tile_n * 128 * 4
                  + 2 * tile_n * lane_v * 4
                  + (8 << 20))
    resident_ok = (v <= 4096) and (vmem_bytes <= (40 << 20))

    if resident_ok:
        n_pad = _round_up(n, tile_n)
        # Pad the tail with index 0 (always valid); padded rows are sliced off.
        idx_pad = jnp.zeros((n_pad, 1), jnp.int32).at[:n, 0].set(
            idx_flat.astype(jnp.int32))
        vmem_limit = min(max(vmem_bytes, 32 << 20), 64 << 20)

        def call(w_spec):
            return pl.pallas_call(
                _embed_abs_kernel,
                out_shape=jax.ShapeDtypeStruct((n_pad, d), weights.dtype),
                grid_spec=pltpu.PrefetchScalarGridSpec(
                    num_scalar_prefetch=0,
                    grid=(n_pad // tile_n,),
                    in_specs=[
                        # Per-tile indices.
                        pl.BlockSpec((tile_n, 1), lambda i: (i, 0)),
                        # Full table, same block every step -> DMA'd once.
                        w_spec,
                    ],
                    out_specs=pl.BlockSpec((tile_n, d), lambda i: (i, 0)),
                ),
                compiler_params=pltpu.CompilerParams(
                    dimension_semantics=("parallel",),
                    vmem_limit_bytes=vmem_limit,
                ),
            )(idx_pad, weights)

        try:
            # Constant block index -> a 2nd pipeline buffer for the table is
            # pure waste; request single buffering (1x table VMEM footprint).
            out_pad = call(pl.BlockSpec((v, d), lambda i: (0, 0),
                                        pipeline_mode=pl.Buffered(1)))
        except Exception:
            # pipeline_mode not honored on this build -> default (double-
            # buffered) spec; vmem_limit already accounts for 2x table.
            out_pad = call(pl.BlockSpec((v, d), lambda i: (0, 0)))
        return out_pad[:n]

    # Large-table path: weights stay out of residence; scalar-prefetched
    # indices drive the weights BlockSpec index_map (one gathered row / step).
    # TODO(synk): batch multiple rows per step with a manual double-buffered
    # DMA gather (memory_space=pl.ANY weights + make_async_copy) for throughput.
    n_pad = _round_up(n, min_sub)
    idx_pad = jnp.zeros((n_pad,), jnp.int32).at[:n].set(idx_flat.astype(jnp.int32))
    out_pad = pl.pallas_call(
        _row_gather_abs_kernel,
        out_shape=jax.ShapeDtypeStruct((n_pad, d), weights.dtype),
        grid_spec=pltpu.PrefetchScalarGridSpec(
            num_scalar_prefetch=1,
            grid=(n_pad,),
            in_specs=[pl.BlockSpec((1, d), lambda i, idx: (idx[i], 0))],
            out_specs=pl.BlockSpec((1, d), lambda i, idx: (i, 0)),
        ),
        compiler_params=pltpu.CompilerParams(
            dimension_semantics=("arbitrary",),
        ),
    )(idx_pad, weights)
    return out_pad[:n]


def slice_embedding_forward(input_idx, dim, start, end, weights):
    """JAX wrapper reproducing SliceEmbeddingModule.forward."""
    # --- glue: aten.slice semantics (static) ---
    ndim = input_idx.ndim
    if dim < 0:
        dim += ndim
    size = input_idx.shape[dim]
    s = start if start is not None else 0
    e = end if end is not None else size
    if s < 0:
        s += size
    if e < 0:
        e += size
    s = max(0, min(s, size))
    e = max(s, min(e, size))
    slicer = tuple(slice(s, e) if ax == dim else slice(None) for ax in range(ndim))
    sliced = input_idx[slicer]

    # --- hot path: embedding gather + abs in Pallas ---
    flat_idx = sliced.reshape(-1).astype(jnp.int32)
    out_flat = _gather_abs(flat_idx, weights)
    return out_flat.reshape(sliced.shape + (weights.shape[1],))


if __name__ == "__main__":
    key = jax.random.PRNGKey(0)
    k_idx, k_w = jax.random.split(key)

    vocab = 32
    embed_dim = 128
    batch = 2
    seq = 16

    # Deterministic inputs / parameters.
    input_idx = jax.random.randint(k_idx, (batch, seq), 0, vocab, dtype=jnp.int32)
    weights = jax.random.normal(k_w, (vocab, embed_dim), dtype=jnp.float32)

    dim, start, end = 1, 4, 12  # slice seq dim: 16 -> 8

    out = slice_embedding_forward(input_idx, dim, start, end, weights)
    out = jax.block_until_ready(out)

    # Sanity check against plain-JAX reference (exact: precision=HIGHEST gather).
    ref = jnp.abs(weights[input_idx[:, start:end]])
    assert out.shape == (batch, end - start, embed_dim), out.shape
    assert jnp.allclose(out, ref), "mismatch vs reference"

    # Also exercise the empty-slice guard.
    empty = slice_embedding_forward(input_idx, 1, 5, 5, weights)
    assert empty.shape == (batch, 0, embed_dim), empty.shape

    print("KERNEL_OK")
</pallas_src>

<mosaic_0001>
module attributes {stable_mosaic.version = 11 : i64} {
  func.func @_embed_abs_kernel(%arg0: i32, %arg1: memref<8x1xi32, #tpu.memory_space<vmem>>, %arg2: memref<32x128xf32, #tpu.memory_space<vmem>>, %arg3: memref<8x128xf32, #tpu.memory_space<vmem>>) attributes {dimension_semantics = [#tpu.dimension_semantics<parallel>], iteration_bounds = array<i64: 2>, scalar_prefetch = 0 : i64, scratch_operands = 0 : i64, tpu.core_type = #tpu.core_type<tc>, window_params = [{transform_indices = @transform_0, window_bounds = array<i64: 8, 1>}, {pipeline_mode = #tpu.pipeline_mode<synchronous>, transform_indices = @transform_1, window_bounds = array<i64: 32, 128>}, {transform_indices = @transform_2, window_bounds = array<i64: 8, 128>}]} {
    %c0 = arith.constant 0 : index
    %c0_0 = arith.constant 0 : index
    %0 = vector.load %arg1[%c0, %c0_0] : memref<8x1xi32, #tpu.memory_space<vmem>>, vector<8x1xi32>
    %1 = tpu.iota {dimensions = array<i32: 1>} : vector<1x32xi32>
    %2 = vector.broadcast %0 : vector<8x1xi32> to vector<8x32xi32>
    %3 = vector.broadcast %1 : vector<1x32xi32> to vector<8x32xi32>
    %4 = arith.cmpi eq, %2, %3 : vector<8x32xi32>
    %5 = arith.extui %4 : vector<8x32xi1> to vector<8x32xi32>
    %6 = arith.sitofp %5 : vector<8x32xi32> to vector<8x32xf32>
    %c0_1 = arith.constant 0 : index
    %c0_2 = arith.constant 0 : index
    %7 = vector.load %arg2[%c0_1, %c0_2] : memref<32x128xf32, #tpu.memory_space<vmem>>, vector<32x128xf32>
    %cst = arith.constant dense<0.000000e+00> : vector<8x128xf32>
    %8 = tpu.matmul %6, %7, %cst {dimension_numbers = #tpu.dot_dimension_numbers<[1], [0], [0], [1], [0, 0, 1, 1], [], []>, precision = #tpu.contract_precision<fp32>} : vector<8x32xf32>, vector<32x128xf32>, vector<8x128xf32> -> vector<8x128xf32>
    %9 = math.absf %8 : vector<8x128xf32>
    %c0_3 = arith.constant 0 : index
    %c0_4 = arith.constant 0 : index
    %10 = vector.load %arg3[%c0_3, %c0_4] : memref<8x128xf32, #tpu.memory_space<vmem>>, vector<8x128xf32>
    tpu.vector_store %arg3[%c0_3, %c0_4], %9 {strides = array<i32>} : memref<8x128xf32, #tpu.memory_space<vmem>>, vector<8x128xf32>,
    return
  }
  func.func @transform_0(%arg0: i32) -> (i32, i32) {
    %c0_i32 = arith.constant 0 : i32
    %c0_i32_0 = arith.constant 0 : i32
    return %arg0, %c0_i32 : i32, i32
  }
  func.func @transform_1(%arg0: i32) -> (i32, i32) {
    %c0_i32 = arith.constant 0 : i32
    %c0_i32_0 = arith.constant 0 : i32
    %c0_i32_1 = arith.constant 0 : i32
    return %c0_i32, %c0_i32_0 : i32, i32
  }
  func.func @transform_2(%arg0: i32) -> (i32, i32) {
    %c0_i32 = arith.constant 0 : i32
    %c0_i32_0 = arith.constant 0 : i32
    return %arg0, %c0_i32 : i32, i32
  }
}

module attributes {stable_mosaic.version = 11 : i64} {
  func.func @_embed_abs_kernel(%arg0: i32, %arg1: memref<8x1xi32, #tpu.memory_space<vmem>>, %arg2: memref<32x128xf32, #tpu.memory_space<vmem>>, %arg3: memref<8x128xf32, #tpu.memory_space<vmem>>) attributes {dimension_semantics = [#tpu.dimension_semantics<parallel>], iteration_bounds = array<i64: 2>, scalar_prefetch = 0 : i64, scratch_operands = 0 : i64, tpu.core_type = #tpu.core_type<tc>, window_params = [{transform_indices = @transform_0, window_bounds = array<i64: 8, 1>}, {pipeline_mode = #tpu.pipeline_mode<synchronous>, transform_indices = @transform_1, window_bounds = array<i64: 32, 128>}, {transform_indices = @transform_2, window_bounds = array<i64: 8, 128>}]} {
    %c0 = arith.constant 0 : index
    %c0_0 = arith.constant 0 : index
    %0 = vector.load %arg1[%c0, %c0_0] : memref<8x1xi32, #tpu.memory_space<vmem>>, vector<8x1xi32>
    %1 = tpu.iota {dimensions = array<i32: 1>} : vector<1x32xi32>
    %2 = vector.broadcast %0 : vector<8x1xi32> to vector<8x32xi32>
    %3 = vector.broadcast %1 : vector<1x32xi32> to vector<8x32xi32>
    %4 = arith.cmpi eq, %2, %3 : vector<8x32xi32>
    %5 = arith.extui %4 : vector<8x32xi1> to vector<8x32xi32>
    %6 = arith.sitofp %5 : vector<8x32xi32> to vector<8x32xf32>
    %c0_1 = arith.constant 0 : index
    %c0_2 = arith.constant 0 : index
    %7 = vector.load %arg2[%c0_1, %c0_2] : memref<32x128xf32, #tpu.memory_space<vmem>>, vector<32x128xf32>
    %cst = arith.constant dense<0.000000e+00> : vector<8x128xf32>
    %8 = tpu.matmul %6, %7, %cst {dimension_numbers = #tpu.dot_dimension_numbers<[1], [0], [0], [1], [0, 0, 1, 1], [], []>, precision = #tpu.contract_precision<fp32>} : vector<8x32xf32>, vector<32x128xf32>, vector<8x128xf32> -> vector<8x128xf32>
    %9 = math.absf %8 : vector<8x128xf32>
    %c0_3 = arith.constant 0 : index
    %c0_4 = arith.constant 0 : index
    %10 = vector.load %arg3[%c0_3, %c0_4] : memref<8x128xf32, #tpu.memory_space<vmem>>, vector<8x128xf32>
    tpu.vector_store %arg3[%c0_3, %c0_4], %9 {strides = array<i32>} : memref<8x128xf32, #tpu.memory_space<vmem>>, vector<8x128xf32>,
    return
  }
  func.func @transform_0(%arg0: i32) -> (i32, i32) {
    %c0_i32 = arith.constant 0 : i32
    %c0_i32_0 = arith.constant 0 : i32
    return %arg0, %c0_i32 : i32, i32
  }
  func.func @transform_1(%arg0: i32) -> (i32, i32) {
    %c0_i32 = arith.constant 0 : i32
    %c0_i32_0 = arith.constant 0 : i32
    %c0_i32_1 = arith.constant 0 : i32
    return %c0_i32, %c0_i32_0 : i32, i32
  }
  func.func @transform_2(%arg0: i32) -> (i32, i32) {
    %c0_i32 = arith.constant 0 : i32
    %c0_i32_0 = arith.constant 0 : i32
    return %arg0, %c0_i32 : i32, i32
  }
}

</mosaic_0001>

<bundles_post_ra>
// kernel: tpu_custom_call.1
= control target key start
LH: loop header
LB: loop body
LE: loop exit
PB: predicated region body
PF: predicated region fallthrough
CT: control target
= control target key end

     0   :  { %7 = vsyncpa [#allocation3], 0  ;;  %s1225_s0 = inlined_call_operand.vmem [shape: s32[16,1], index: 0, kind: input, shape index: {}]   ;;  %s1226_s1 = inlined_call_operand.hbm [shape: f32[32,128], index: 1, kind: input, shape index: {}]   ;;  %s1227_s2 = inlined_call_operand.hbm [shape: f32[16,128], index: 2, kind: output, shape index: {}]  }
   0x1   :  { %8 = vsyncpa [#allocation4], 0 }
   0x2   :  { %10 = vsyncpa [#allocation4 + $0x1], 0  ;;  %s1025_s9 = smov 0   ;;  %s1027_s10 = smov 0  }
   0x3   :  { %s1029_s11 = smov 0   ;;  %s1031_s12 = smov 0  }
   0x4 LB: > { %s1046_s13 = sadd.s32 4294967295, %s1001_s12   ;;  %s743_s14 = sadd.s32 4294967294, %s1001_s12   ;;  %s1001_s12 = sphi %s1031_s12, %s1235_s12   ;;  %s997_s11 = sphi %s1029_s11, %s1234_s11   ;;  %s993_s10 = sphi %s1027_s10, %s1233_s10   ;;  %s989_s9 = sphi %s1025_s9, %s1232_s9  }
   0x5   : > { %s1050_s15 = sadd.s32 1, %s1001_s12   ;;  %s70_s16 = sadd.s32 1, %s997_s11 }
   0x6   : > { %s67_s17 = ssub.s32 %s1001_s12, %s1050_s15  ;;  %p80_p0 = scmp.ne.s32.totalorder %s997_s11, %s993_s10 }
   0x7   : > { %p68_p1 = scmp.eq.s32.totalorder %s67_s17, 0  ;;  %p81_p2 = scmp.eq.s32.totalorder %s1046_s13, 1 }
   0x8   : > { %p86_p3 = scmp.ne.s32.totalorder %s993_s10, %s989_s9  ;;  %p87_p4 = scmp.eq.s32.totalorder %s743_s14, 1 }
   0x9   : > { %s1061_s18 = scalar_select %p68_p1, %s997_s11, %s70_s16  }
   0xa   : > { %p1063_p5 = por %p81_p2, %p80_p0  ;;  %p1067_p6 = por %p87_p4, %p86_p3 }
   0xb   : > { %p744_p7 = scmp.ge.s32.totalorder %s1001_s12, 1  ;;  %p94_p8 = scmp.lt.s32.totalorder %s1001_s12, 3 }
   0xc   : > { %s1229_s20 = scalar_select %p1067_p6, 1, 0 }
   0xd   : > { %p869_p9 = scmp.eq.s32.totalorder %s1046_s13, 0  ;;  %p1074_p10 = pnand %p744_p7, %p94_p8 }
   0xe   : > { %s1003_s22 = smov [#allocation2]  }
   0xf   : > { %s106_s23 = sshll.u32 %s1003_s22, 4  ;;  %p861_p11 = pneg %p1074_p10  ;;  %s107_s23 = int_to_ptr.vmem [resolvable:$true] %s106_s23 }
  0x10   : > { %s922_s24 = scalar_lea.vmem %s107_s23, 512  ;;  %p930_p3 = scmp.lt.s32.totalorder %s107_s23, %s107_s23 }
  0x11   : > { %p862_p12 = pnand %p869_p9, %p861_p11  ;;  %p923_p0 = scmp.ne.s32.totalorder %s107_s23, %s922_s24 }
  0x12   : > { %p931_p4 = scmp.lt.s32.totalorder %s922_s24, %s922_s24 }
  0x13   : > { %p913_p13 = pneg %p862_p12 }
  0x14   : > { %p932_p6 = por %p931_p4, %p930_p3 }
  0x15   : > { %p925_p1 = pnand %p923_p0, %p913_p13 }
  0x17   : > { %p926_p2 = pneg %p925_p1 }
  0x19   : > { %p933_p7 = pnand %p932_p6, %p926_p2 }
  0x1b   : > { %936 = shalt.err (!%p933_p7)
}
  0x1c   : > { %s1004_s25 = smov 128   ;;  %s1005_s26 = smov 8  }
  0x1d   : > { %864 = dma.hbm_to_vmem [thread:$0]  (!%p862_p12), %s1226_s1, 512, %s107_s23, [#allocation3], %s1004_s25, %s1004_s25, %s1005_s26  }
  0x1e   : > { %129 = sbr.rel (%p1074_p10) target bundleno = 407 (0x197), region = 28 }
  0x23   : > { %980 = dma.done.wait (%p869_p9), [#allocation3], 512  }
  0x24   : > { %982 = vsyncadd (%p869_p9), [#allocation3], 4294966784  ;;  %p150_p8 = scmp.lt.s32.totalorder %s1046_s13, 1  ;;  %v1006_v0 = vmov 0   ;;  %v1007_v1 = vmov 0.0   ;;  %vm1008_vm0 = vmmov 0   ;;  %v155_v27 = vlaneseq }
  0x25   : > { %910 = vset.pattern.permute.xlu0 %v1006_v0  ;;  %800 = vmatprep.subr.mxu1 %v1007_v1  ;;  %v166_v3 = vld [vmem:[#allocation2 + $0x18] sm:$0xff]  ;;  %v165_v4 = vld [vmem:[#allocation2 + $0x10] sm:$0xff]  ;;  %v164_v7 = vld [vmem:[#allocation2 + $0x8] sm:$0xff]  ;;  %vm167_vm1 = vcmask 261120   ;;  %s147_s6 = sand.u32 1, %s993_s10   ;;  %s756_s8 = sshll.u32 %s1046_s13, 7 }
  0x26   : > { %s151_s29 = scalar_select %p150_p8, %s1046_s13, 1  ;;  %789 = vmatprep.subr.mxu0 %v1007_v1  ;;  %808 = vmatprep.mubr.msk.f32.mxu1 %vm1008_vm0, %v1007_v1  ;;  %v196_v5 = vand.u32 4294901760, %v166_v3  ;;  %v1102_v6 = vand.u32 4294901760, %v165_v4  ;;  %v163_v8 = vld [vmem:[#allocation2] sm:$0xff]  ;;  %v1104_v9 = vand.u32 4294901760, %v164_v7  ;;  %v156_v28 = vand.u32 127, %v155_v27 }
  0x27   : > { %797 = vmatprep.mubr.msk.f32.mxu0 %vm1008_vm0, %v1007_v1  ;;  %v1106_v10 = vand.u32 4294901760, %v163_v8  ;;  %s749_s7 = sshll.u32 %s147_s6, 3  ;;  %s670_s22 = scalar_lea.hbm %s1227_s2, %s756_s8 }
  0x28   : > { %s750_s30 = sshll.u32 %s151_s29, 3  ;;  %v1108_v11 = vsub.f32 %v166_v3, %v196_v5  ;;  %v1111_v12 = vsub.f32 %v165_v4, %v1102_v6  ;;  %790 = vmatpush3.msra.mxu0 %v196_v5  ;;  %v1114_v13 = vsub.f32 %v164_v7, %v1104_v9  ;;  %s149_s14 = scalar_lea.vmem [#allocation5], %s749_s7 }
  0x29   : > { %s153_s5 = scalar_lea.vmem %s1225_s0, %s750_s30  ;;  %v1117_v14 = vsub.f32 %v163_v8, %v1106_v10  ;;  %791 = vmatprep.subr.mxu0 %v1007_v1  ;;  %s672_s16 = sshll.u32 %s149_s14, 4  ;;  %s673_s16 = int_to_ptr.vmem [resolvable:$true] %s672_s16 }
  0x2a   : > { %v154_v2 = vld [vmem:[%s153_s5] sm:$0xff]  ;;  %v277_v15 = vand.u32 4294901760, %v1108_v11  ;;  %v284_v16 = vand.u32 4294901760, %v1111_v12  ;;  %792 = vmatpush3.msra.mxu0 %v1102_v6  ;;  %v291_v17 = vand.u32 4294901760, %v1114_v13  ;;  %s659_s23 = scalar_lea.sflag [#allocation4], %s147_s6  ;;  %s937_s24 = scalar_lea.vmem %s673_s16, 128 }
  0x2b   : > { %158 = vperm.xlu0 %910, %v154_v2   ;;  %v298_v18 = vand.u32 4294901760, %v1117_v14  ;;  %793 = vmatprep.subr.mxu0 %v1007_v1  ;;  %p938_p6 = scmp.ne.s32.totalorder %s673_s16, %s937_s24  ;;  %s1009_s25 = smov [#allocation5]  }
  0x2c   : > { %v278_v19 = vsub.f32 %v1108_v11, %v277_v15  ;;  %v285_v20 = vsub.f32 %v1111_v12, %v284_v16  ;;  %794 = vmatpush3.msra.mxu0 %v1104_v9  ;;  %v292_v21 = vsub.f32 %v1114_v13, %v291_v17  ;;  %s941_s26 = sshll.u32 %s1009_s25, 4  ;;  %s942_s26 = int_to_ptr.vmem [resolvable:$false] %s941_s26 }
  0x2d   : > { %795 = vmatprep.subr.mxu0 %v1007_v1  ;;  %v299_v24 = vsub.f32 %v1117_v14, %v298_v18  ;;  %p939_p9 = pnand %p938_p6, %p1063_p5  ;;  %s943_s13 = scalar_lea.vmem %s942_s26, 256 }
  0x2e   : > { %v279_v22 = vand.u32 4294901760, %v278_v19  ;;  %v286_v23 = vand.u32 4294901760, %v285_v20  ;;  %796 = vmatpush3.msra.mxu0 %v1106_v10  ;;  %v293_v25 = vand.u32 4294901760, %v292_v21  ;;  %p944_p11 = scmp.lt.s32.totalorder %s673_s16, %s942_s26  ;;  %p945_p12 = scmp.lt.s32.totalorder %s943_s13, %s937_s24 }
  0x2f   : > { %811 = vmatprep.subr.mxu0 %v1007_v1  ;;  %v300_v26 = vand.u32 4294901760, %v299_v24  ;;  %p940_p10 = pneg %p939_p9 }
  0x30   : > { %801 = vmatpush3.msra.mxu1 %v279_v22  ;;  %p946_p13 = por %p945_p12, %p944_p11 }
  0x31   : > { %802 = vmatprep.subr.mxu1 %v1007_v1 }
  0x32   : > { %803 = vmatpush3.msra.mxu1 %v286_v23  ;;  %p947_p0 = pnand %p946_p13, %p940_p10 }
  0x33   : > { %804 = vmatprep.subr.mxu1 %v1007_v1 }
  0x34   : > { %805 = vmatpush3.msra.mxu1 %v293_v25 }
  0x35   : > { %806 = vmatprep.subr.mxu1 %v1007_v1 }
  0x36   : > { %807 = vmatpush3.msra.mxu1 %v300_v26 }
  0x37   : > { %822 = vmatprep.subr.mxu1 %v1007_v1 }
  0xa6   : > { %v159_v29 = vpop.permute.xlu0 %158 }
  0xa7   : > { %vm160_vm2 = vcmp.eq.s32.totalorder %v159_v29, %v156_v28 }
  0xa8   : > { %v751_v30 = vsel %vm160_vm2, 1.0, %v1007_v1 }
  0xa9   : > { %v169_v31 = vsel %vm167_vm1, %v751_v30, 0  ;;  %809 = vmatmul.mubr.msk.f32.vlgmr.msra.gmra.mxu1 %vm167_vm1, %v751_v30 }
  0xaa   : > { %v241_v32 = vsub.f32 %v169_v31, %v169_v31  ;;  %823 = vmatpush3.msra.mxu1 %v196_v5  ;;  %830 = vmatprep.mubr.msk.f32.mxu1 %vm1008_vm0, %v1007_v1 }
  0xab   : > { %824 = vmatprep.subr.mxu1 %v1007_v1 }
  0xac   : > { %825 = vmatpush3.msra.mxu1 %v1102_v6  ;;  %v242_v33 = vand.u32 4294901760, %v241_v32 }
  0xad   : > { %826 = vmatprep.subr.mxu1 %v1007_v1 }
  0xae   : > { %827 = vmatpush3.msra.mxu1 %v1104_v9  ;;  %v243_v34 = vsub.f32 %v241_v32, %v242_v33 }
  0xaf   : > { %828 = vmatprep.subr.mxu1 %v1007_v1 }
  0xb0   : > { %829 = vmatpush3.msra.mxu1 %v1106_v10  ;;  %v244_v35 = vand.u32 4294901760, %v243_v34 }
  0xb1   : > { %831 = vmatmul.mubr.f32.vlgmr.msra.gmra.mxu1 %v242_v33  ;;  %844 = vmatprep.subr.mxu1 %v1007_v1 }
  0xb2   : > { %845 = vmatpush3.msra.mxu1 %v196_v5  ;;  %798 = vmatmul.mubr.f32.vlgmr.msra.gmra.mxu0 %v244_v35 }
  0xb3   : > { %812 = vmatpush3.msra.mxu0 %v1108_v11  ;;  %846 = vmatprep.subr.mxu1 %v1007_v1 }
  0xb4   : > { %813 = vmatprep.subr.mxu0 %v1007_v1  ;;  %847 = vmatpush3.msra.mxu1 %v1102_v6 }
  0xb5   : > { %814 = vmatpush3.msra.mxu0 %v1111_v12  ;;  %848 = vmatprep.subr.mxu1 %v1007_v1 }
  0xb6   : > { %815 = vmatprep.subr.mxu0 %v1007_v1  ;;  %849 = vmatpush3.msra.mxu1 %v1104_v9 }
  0xb7   : > { %816 = vmatpush3.msra.mxu0 %v1114_v13  ;;  %850 = vmatprep.subr.mxu1 %v1007_v1 }
  0xb8   : > { %817 = vmatprep.subr.mxu0 %v1007_v1  ;;  %851 = vmatpush3.msra.mxu1 %v1106_v10 }
  0xb9   : > { %852 = vmatprep.mubr.msk.f32.mxu1 %vm1008_vm0, %v1007_v1  ;;  %818 = vmatpush3.msra.mxu0 %v1117_v14 }
  0xba   : > { %819 = vmatprep.mubr.msk.f32.mxu0 %vm1008_vm0, %v1007_v1  ;;  %853 = vmatmul.mubr.msk.f32.vlgmr.msra.gmra.mxu1 %vm167_vm1, %v751_v30 }
  0xbb   : > { %820 = vmatmul.mubr.f32.vlgmr.msra.gmra.mxu0 %v241_v32  ;;  %833 = vmatprep.subr.mxu0 %v1007_v1 }
  0xbc   : > { %834 = vmatpush3.msra.mxu0 %v277_v15  ;;  %841 = vmatprep.mubr.msk.f32.mxu0 %vm1008_vm0, %v1007_v1 }
  0xbd   : > { %835 = vmatprep.subr.mxu0 %v1007_v1 }
  0xbe   : > { %836 = vmatpush3.msra.mxu0 %v284_v16 }
  0xbf   : > { %837 = vmatprep.subr.mxu0 %v1007_v1 }
  0xc0   : > { %838 = vmatpush3.msra.mxu0 %v291_v17 }
  0xc1   : > { %839 = vmatprep.subr.mxu0 %v1007_v1 }
  0xc2   : > { %840 = vmatpush3.msra.mxu0 %v298_v18 }
  0xc3   : > { %842 = vmatmul.mubr.msk.f32.vlgmr.msra.gmra.mxu0 %vm167_vm1, %v751_v30 }
 0x169   : > { %v337_v36 = vpop.f32.mrf.mxu1 }
 0x16b   : > { %v810_v37 = vpop.f32.mrf.mxu1 }
 0x171   : > { %v494_v38 = vpop.f32.mrf.mxu1 }
 0x172   : > { %v246_v39 = vpop.f32.mrf.mxu0 }
 0x173   : > { %v832_v40 = vpop.f32.mrf.mxu1  ;;  %v338_v44 = vadd.f32 %v337_v36, %v246_v39 }
 0x174   : > { %v799_v41 = vpop.f32.mrf.mxu0 }
 0x17a   : > { %v652_v42 = vpop.f32.mrf.mxu1 }
 0x17b   : > { %v417_v43 = vpop.f32.mrf.mxu0 }
 0x17c   : > { %v854_v45 = vpop.f32.mrf.mxu1  ;;  %v418_v47 = vadd.f32 %v417_v43, %v338_v44 }
 0x17d   : > { %v821_v46 = vpop.f32.mrf.mxu0 }
 0x17e   : > { %v495_v48 = vadd.f32 %v494_v38, %v418_v47 }
 0x183   : > { %v577_v49 = vpop.f32.mrf.mxu0 }
 0x184   : > { %v578_v50 = vadd.f32 %v577_v49, %v495_v48 }
 0x185   : > { %v843_v51 = vpop.f32.mrf.mxu0 }
 0x186   : > { %v653_v52 = vadd.f32 %v652_v42, %v578_v50 }
 0x188   : > { %v656_v53 = vand.u32 2147483647, %v653_v52 }
 0x18a   : > { %657 = vst [vmem:[%s149_s14] sm:$0xff] %v656_v53 }
 0x18b   : > { %950 = shalt.err (!%p947_p0)
}
 0x18c   : > { %s951_s27 = scalar_lea.hbm %s670_s22, 128  ;;  %s955_s30 = scalar_lea.hbm %s1227_s2, 256 }
 0x18d   : > { %p952_p1 = scmp.ne.s32.totalorder %s670_s22, %s951_s27  ;;  %p956_p4 = scmp.lt.s32.totalorder %s670_s22, %s1227_s2 }
 0x18e   : > { %p957_p7 = scmp.lt.s32.totalorder %s955_s30, %s951_s27 }
 0x18f   : > { %p953_p2 = pnand %p952_p1, %p1063_p5 }
 0x190   : > { %p958_p8 = por %p957_p7, %p956_p4 }
 0x191   : > { %p954_p3 = pneg %p953_p2 }
 0x193   : > { %p959_p6 = pnand %p958_p8, %p954_p3 }
 0x195   : > { %962 = shalt.err (!%p959_p6)
}
 0x196   : > { %859 = dma.vmem_to_hbm [thread:$0]  (%p1063_p5), %s673_s16, 128, %s670_s22, %s659_s23  }
 0x197 PF: > { %p871_p9 = scmp.ge.s32.totalorder %s1001_s12, 2  ;;  %s684_s5 = sand.u32 1, %s989_s9  }
 0x198   : > { %p1231_p10 = scmp.ne.s32.totalorder %s1229_s20, 0  ;;  %s685_s6 = scalar_lea.sflag [#allocation4], %s684_s5 }
 0x19a   : > { %p866_p11 = pnand %p871_p9, %p1231_p10 }
 0x19c   : > { %p867_p12 = pneg %p866_p11 }
 0x19e   : > { %984 = dma.done.wait (%p867_p12), %s685_s6, 128  }
 0x19f   : > { %986 = vsyncadd (%p867_p12), %s685_s6, 4294967168  ;;  %p13_p13 = scmp.ge.s32.totalorder %s1050_s15, 4   ;;  %s1232_s9 = smov %s993_s10 }
 0x1a0   : > { %s1233_s10 = smov %s997_s11  ;;  %s1234_s11 = smov %s1061_s18 }
 0x1a1   : > { %s1235_s12 = smov %s1050_s15  ;;  %15 = sbr.rel (!%p13_p13) target bundleno = 4 (0x4), region = 68 }
 0x1a6   :  { %690 = vsyncpa [#allocation3], 1 }
 0x1a7   :  { %692 = vsyncpa [#allocation3 + $0x1], 1 }
 0x1a8   :  { %693 = vsyncpa [#allocation4], 1 }
 0x1a9   :  { %695 = vsyncpa [#allocation4 + $0x1], 1 }

// kernel: tpu_custom_call.1
= control target key start
LH: loop header
LB: loop body
LE: loop exit
PB: predicated region body
PF: predicated region fallthrough
CT: control target
= control target key end

     0   :  { %7 = vsyncpa [#allocation3], 0  ;;  %s1225_s0 = inlined_call_operand.vmem [shape: s32[16,1], index: 0, kind: input, shape index: {}]   ;;  %s1226_s1 = inlined_call_operand.hbm [shape: f32[32,128], index: 1, kind: input, shape index: {}]   ;;  %s1227_s2 = inlined_call_operand.hbm [shape: f32[16,128], index: 2, kind: output, shape index: {}]  }
   0x1   :  { %8 = vsyncpa [#allocation4], 0 }
   0x2   :  { %10 = vsyncpa [#allocation4 + $0x1], 0  ;;  %s1025_s9 = smov 0   ;;  %s1027_s10 = smov 0  }
   0x3   :  { %s1029_s11 = smov 0   ;;  %s1031_s12 = smov 0  }
   0x4 LB: > { %s1046_s13 = sadd.s32 4294967295, %s1001_s12   ;;  %s743_s14 = sadd.s32 4294967294, %s1001_s12   ;;  %s1001_s12 = sphi %s1031_s12, %s1235_s12   ;;  %s997_s11 = sphi %s1029_s11, %s1234_s11   ;;  %s993_s10 = sphi %s1027_s10, %s1233_s10   ;;  %s989_s9 = sphi %s1025_s9, %s1232_s9  }
   0x5   : > { %s1050_s15 = sadd.s32 1, %s1001_s12   ;;  %s70_s16 = sadd.s32 1, %s997_s11 }
   0x6   : > { %s67_s17 = ssub.s32 %s1001_s12, %s1050_s15  ;;  %p80_p0 = scmp.ne.s32.totalorder %s997_s11, %s993_s10 }
   0x7   : > { %p68_p1 = scmp.eq.s32.totalorder %s67_s17, 0  ;;  %p81_p2 = scmp.eq.s32.totalorder %s1046_s13, 1 }
   0x8   : > { %p86_p3 = scmp.ne.s32.totalorder %s993_s10, %s989_s9  ;;  %p87_p4 = scmp.eq.s32.totalorder %s743_s14, 1 }
   0x9   : > { %s1061_s18 = scalar_select %p68_p1, %s997_s11, %s70_s16  }
   0xa   : > { %p1063_p5 = por %p81_p2, %p80_p0  ;;  %p1067_p6 = por %p87_p4, %p86_p3 }
   0xb   : > { %p744_p7 = scmp.ge.s32.totalorder %s1001_s12, 1  ;;  %p94_p8 = scmp.lt.s32.totalorder %s1001_s12, 3 }
   0xc   : > { %s1229_s20 = scalar_select %p1067_p6, 1, 0 }
   0xd   : > { %p869_p9 = scmp.eq.s32.totalorder %s1046_s13, 0  ;;  %p1074_p10 = pnand %p744_p7, %p94_p8 }
   0xe   : > { %s1003_s22 = smov [#allocation2]  }
   0xf   : > { %s106_s23 = sshll.u32 %s1003_s22, 4  ;;  %p861_p11 = pneg %p1074_p10  ;;  %s107_s23 = int_to_ptr.vmem [resolvable:$true] %s106_s23 }
  0x10   : > { %s922_s24 = scalar_lea.vmem %s107_s23, 512  ;;  %p930_p3 = scmp.lt.s32.totalorder %s107_s23, %s107_s23 }
  0x11   : > { %p862_p12 = pnand %p869_p9, %p861_p11  ;;  %p923_p0 = scmp.ne.s32.totalorder %s107_s23, %s922_s24 }
  0x12   : > { %p931_p4 = scmp.lt.s32.totalorder %s922_s24, %s922_s24 }
  0x13   : > { %p913_p13 = pneg %p862_p12 }
  0x14   : > { %p932_p6 = por %p931_p4, %p930_p3 }
  0x15   : > { %p925_p1 = pnand %p923_p0, %p913_p13 }
  0x17   : > { %p926_p2 = pneg %p925_p1 }
  0x19   : > { %p933_p7 = pnand %p932_p6, %p926_p2 }
  0x1b   : > { %936 = shalt.err (!%p933_p7)
}
  0x1c   : > { %s1004_s25 = smov 128   ;;  %s1005_s26 = smov 8  }
  0x1d   : > { %864 = dma.hbm_to_vmem [thread:$0]  (!%p862_p12), %s1226_s1, 512, %s107_s23, [#allocation3], %s1004_s25, %s1004_s25, %s1005_s26  }
  0x1e   : > { %129 = sbr.rel (%p1074_p10) target bundleno = 407 (0x197), region = 28 }
  0x23   : > { %980 = dma.done.wait (%p869_p9), [#allocation3], 512  }
  0x24   : > { %982 = vsyncadd (%p869_p9), [#allocation3], 4294966784  ;;  %p150_p8 = scmp.lt.s32.totalorder %s1046_s13, 1  ;;  %v1006_v0 = vmov 0   ;;  %v1007_v1 = vmov 0.0   ;;  %vm1008_vm0 = vmmov 0   ;;  %v155_v27 = vlaneseq }
  0x25   : > { %910 = vset.pattern.permute.xlu0 %v1006_v0  ;;  %800 = vmatprep.subr.mxu1 %v1007_v1  ;;  %v166_v3 = vld [vmem:[#allocation2 + $0x18] sm:$0xff]  ;;  %v165_v4 = vld [vmem:[#allocation2 + $0x10] sm:$0xff]  ;;  %v164_v7 = vld [vmem:[#allocation2 + $0x8] sm:$0xff]  ;;  %vm167_vm1 = vcmask 261120   ;;  %s147_s6 = sand.u32 1, %s993_s10   ;;  %s756_s8 = sshll.u32 %s1046_s13, 7 }
  0x26   : > { %s151_s29 = scalar_select %p150_p8, %s1046_s13, 1  ;;  %789 = vmatprep.subr.mxu0 %v1007_v1  ;;  %808 = vmatprep.mubr.msk.f32.mxu1 %vm1008_vm0, %v1007_v1  ;;  %v196_v5 = vand.u32 4294901760, %v166_v3  ;;  %v1102_v6 = vand.u32 4294901760, %v165_v4  ;;  %v163_v8 = vld [vmem:[#allocation2] sm:$0xff]  ;;  %v1104_v9 = vand.u32 4294901760, %v164_v7  ;;  %v156_v28 = vand.u32 127, %v155_v27 }
  0x27   : > { %797 = vmatprep.mubr.msk.f32.mxu0 %vm1008_vm0, %v1007_v1  ;;  %v1106_v10 = vand.u32 4294901760, %v163_v8  ;;  %s749_s7 = sshll.u32 %s147_s6, 3  ;;  %s670_s22 = scalar_lea.hbm %s1227_s2, %s756_s8 }
  0x28   : > { %s750_s30 = sshll.u32 %s151_s29, 3  ;;  %v1108_v11 = vsub.f32 %v166_v3, %v196_v5  ;;  %v1111_v12 = vsub.f32 %v165_v4, %v1102_v6  ;;  %790 = vmatpush3.msra.mxu0 %v196_v5  ;;  %v1114_v13 = vsub.f32 %v164_v7, %v1104_v9  ;;  %s149_s14 = scalar_lea.vmem [#allocation5], %s749_s7 }
  0x29   : > { %s153_s5 = scalar_lea.vmem %s1225_s0, %s750_s30  ;;  %v1117_v14 = vsub.f32 %v163_v8, %v1106_v10  ;;  %791 = vmatprep.subr.mxu0 %v1007_v1  ;;  %s672_s16 = sshll.u32 %s149_s14, 4  ;;  %s673_s16 = int_to_ptr.vmem [resolvable:$true] %s672_s16 }
  0x2a   : > { %v154_v2 = vld [vmem:[%s153_s5] sm:$0xff]  ;;  %v277_v15 = vand.u32 4294901760, %v1108_v11  ;;  %v284_v16 = vand.u32 4294901760, %v1111_v12  ;;  %792 = vmatpush3.msra.mxu0 %v1102_v6  ;;  %v291_v17 = vand.u32 4294901760, %v1114_v13  ;;  %s659_s23 = scalar_lea.sflag [#allocation4], %s147_s6  ;;  %s937_s24 = scalar_lea.vmem %s673_s16, 128 }
  0x2b   : > { %158 = vperm.xlu0 %910, %v154_v2   ;;  %v298_v18 = vand.u32 4294901760, %v1117_v14  ;;  %793 = vmatprep.subr.mxu0 %v1007_v1  ;;  %p938_p6 = scmp.ne.s32.totalorder %s673_s16, %s937_s24  ;;  %s1009_s25 = smov [#allocation5]  }
  0x2c   : > { %v278_v19 = vsub.f32 %v1108_v11, %v277_v15  ;;  %v285_v20 = vsub.f32 %v1111_v12, %v284_v16  ;;  %794 = vmatpush3.msra.mxu0 %v1104_v9  ;;  %v292_v21 = vsub.f32 %v1114_v13, %v291_v17  ;;  %s941_s26 = sshll.u32 %s1009_s25, 4  ;;  %s942_s26 = int_to_ptr.vmem [resolvable:$false] %s941_s26 }
  0x2d   : > { %795 = vmatprep.subr.mxu0 %v1007_v1  ;;  %v299_v24 = vsub.f32 %v1117_v14, %v298_v18  ;;  %p939_p9 = pnand %p938_p6, %p1063_p5  ;;  %s943_s13 = scalar_lea.vmem %s942_s26, 256 }
  0x2e   : > { %v279_v22 = vand.u32 4294901760, %v278_v19  ;;  %v286_v23 = vand.u32 4294901760, %v285_v20  ;;  %796 = vmatpush3.msra.mxu0 %v1106_v10  ;;  %v293_v25 = vand.u32 4294901760, %v292_v21  ;;  %p944_p11 = scmp.lt.s32.totalorder %s673_s16, %s942_s26  ;;  %p945_p12 = scmp.lt.s32.totalorder %s943_s13, %s937_s24 }
  0x2f   : > { %811 = vmatprep.subr.mxu0 %v1007_v1  ;;  %v300_v26 = vand.u32 4294901760, %v299_v24  ;;  %p940_p10 = pneg %p939_p9 }
  0x30   : > { %801 = vmatpush3.msra.mxu1 %v279_v22  ;;  %p946_p13 = por %p945_p12, %p944_p11 }
  0x31   : > { %802 = vmatprep.subr.mxu1 %v1007_v1 }
  0x32   : > { %803 = vmatpush3.msra.mxu1 %v286_v23  ;;  %p947_p0 = pnand %p946_p13, %p940_p10 }
  0x33   : > { %804 = vmatprep.subr.mxu1 %v1007_v1 }
  0x34   : > { %805 = vmatpush3.msra.mxu1 %v293_v25 }
  0x35   : > { %806 = vmatprep.subr.mxu1 %v1007_v1 }
  0x36   : > { %807 = vmatpush3.msra.mxu1 %v300_v26 }
  0x37   : > { %822 = vmatprep.subr.mxu1 %v1007_v1 }
  0xa6   : > { %v159_v29 = vpop.permute.xlu0 %158 }
  0xa7   : > { %vm160_vm2 = vcmp.eq.s32.totalorder %v159_v29, %v156_v28 }
  0xa8   : > { %v751_v30 = vsel %vm160_vm2, 1.0, %v1007_v1 }
  0xa9   : > { %v169_v31 = vsel %vm167_vm1, %v751_v30, 0  ;;  %809 = vmatmul.mubr.msk.f32.vlgmr.msra.gmra.mxu1 %vm167_vm1, %v751_v30 }
  0xaa   : > { %v241_v32 = vsub.f32 %v169_v31, %v169_v31  ;;  %823 = vmatpush3.msra.mxu1 %v196_v5  ;;  %830 = vmatprep.mubr.msk.f32.mxu1 %vm1008_vm0, %v1007_v1 }
  0xab   : > { %824 = vmatprep.subr.mxu1 %v1007_v1 }
  0xac   : > { %825 = vmatpush3.msra.mxu1 %v1102_v6  ;;  %v242_v33 = vand.u32 4294901760, %v241_v32 }
  0xad   : > { %826 = vmatprep.subr.mxu1 %v1007_v1 }
  0xae   : > { %827 = vmatpush3.msra.mxu1 %v1104_v9  ;;  %v243_v34 = vsub.f32 %v241_v32, %v242_v33 }
  0xaf   : > { %828 = vmatprep.subr.mxu1 %v1007_v1 }
  0xb0   : > { %829 = vmatpush3.msra.mxu1 %v1106_v10  ;;  %v244_v35 = vand.u32 4294901760, %v243_v34 }
  0xb1   : > { %831 = vmatmul.mubr.f32.vlgmr.msra.gmra.mxu1 %v242_v33  ;;  %844 = vmatprep.subr.mxu1 %v1007_v1 }
  0xb2   : > { %845 = vmatpush3.msra.mxu1 %v196_v5  ;;  %798 = vmatmul.mubr.f32.vlgmr.msra.gmra.mxu0 %v244_v35 }
  0xb3   : > { %812 = vmatpush3.msra.mxu0 %v1108_v11  ;;  %846 = vmatprep.subr.mxu1 %v1007_v1 }
  0xb4   : > { %813 = vmatprep.subr.mxu0 %v1007_v1  ;;  %847 = vmatpush3.msra.mxu1 %v1102_v6 }
  0xb5   : > { %814 = vmatpush3.msra.mxu0 %v1111_v12  ;;  %848 = vmatprep.subr.mxu1 %v1007_v1 }
  0xb6   : > { %815 = vmatprep.subr.mxu0 %v1007_v1  ;;  %849 = vmatpush3.msra.mxu1 %v1104_v9 }
  0xb7   : > { %816 = vmatpush3.msra.mxu0 %v1114_v13  ;;  %850 = vmatprep.subr.mxu1 %v1007_v1 }
  0xb8   : > { %817 = vmatprep.subr.mxu0 %v1007_v1  ;;  %851 = vmatpush3.msra.mxu1 %v1106_v10 }
  0xb9   : > { %852 = vmatprep.mubr.msk.f32.mxu1 %vm1008_vm0, %v1007_v1  ;;  %818 = vmatpush3.msra.mxu0 %v1117_v14 }
  0xba   : > { %819 = vmatprep.mubr.msk.f32.mxu0 %vm1008_vm0, %v1007_v1  ;;  %853 = vmatmul.mubr.msk.f32.vlgmr.msra.gmra.mxu1 %vm167_vm1, %v751_v30 }
  0xbb   : > { %820 = vmatmul.mubr.f32.vlgmr.msra.gmra.mxu0 %v241_v32  ;;  %833 = vmatprep.subr.mxu0 %v1007_v1 }
  0xbc   : > { %834 = vmatpush3.msra.mxu0 %v277_v15  ;;  %841 = vmatprep.mubr.msk.f32.mxu0 %vm1008_vm0, %v1007_v1 }
  0xbd   : > { %835 = vmatprep.subr.mxu0 %v1007_v1 }
  0xbe   : > { %836 = vmatpush3.msra.mxu0 %v284_v16 }
  0xbf   : > { %837 = vmatprep.subr.mxu0 %v1007_v1 }
  0xc0   : > { %838 = vmatpush3.msra.mxu0 %v291_v17 }
  0xc1   : > { %839 = vmatprep.subr.mxu0 %v1007_v1 }
  0xc2   : > { %840 = vmatpush3.msra.mxu0 %v298_v18 }
  0xc3   : > { %842 = vmatmul.mubr.msk.f32.vlgmr.msra.gmra.mxu0 %vm167_vm1, %v751_v30 }
 0x169   : > { %v337_v36 = vpop.f32.mrf.mxu1 }
 0x16b   : > { %v810_v37 = vpop.f32.mrf.mxu1 }
 0x171   : > { %v494_v38 = vpop.f32.mrf.mxu1 }
 0x172   : > { %v246_v39 = vpop.f32.mrf.mxu0 }
 0x173   : > { %v832_v40 = vpop.f32.mrf.mxu1  ;;  %v338_v44 = vadd.f32 %v337_v36, %v246_v39 }
 0x174   : > { %v799_v41 = vpop.f32.mrf.mxu0 }
 0x17a   : > { %v652_v42 = vpop.f32.mrf.mxu1 }
 0x17b   : > { %v417_v43 = vpop.f32.mrf.mxu0 }
 0x17c   : > { %v854_v45 = vpop.f32.mrf.mxu1  ;;  %v418_v47 = vadd.f32 %v417_v43, %v338_v44 }
 0x17d   : > { %v821_v46 = vpop.f32.mrf.mxu0 }
 0x17e   : > { %v495_v48 = vadd.f32 %v494_v38, %v418_v47 }
 0x183   : > { %v577_v49 = vpop.f32.mrf.mxu0 }
 0x184   : > { %v578_v50 = vadd.f32 %v577_v49, %v495_v48 }
 0x185   : > { %v843_v51 = vpop.f32.mrf.mxu0 }
 0x186   : > { %v653_v52 = vadd.f32 %v652_v42, %v578_v50 }
 0x188   : > { %v656_v53 = vand.u32 2147483647, %v653_v52 }
 0x18a   : > { %657 = vst [vmem:[%s149_s14] sm:$0xff] %v656_v53 }
 0x18b   : > { %950 = shalt.err (!%p947_p0)
}
 0x18c   : > { %s951_s27 = scalar_lea.hbm %s670_s22, 128  ;;  %s955_s30 = scalar_lea.hbm %s1227_s2, 256 }
 0x18d   : > { %p952_p1 = scmp.ne.s32.totalorder %s670_s22, %s951_s27  ;;  %p956_p4 = scmp.lt.s32.totalorder %s670_s22, %s1227_s2 }
 0x18e   : > { %p957_p7 = scmp.lt.s32.totalorder %s955_s30, %s951_s27 }
 0x18f   : > { %p953_p2 = pnand %p952_p1, %p1063_p5 }
 0x190   : > { %p958_p8 = por %p957_p7, %p956_p4 }
 0x191   : > { %p954_p3 = pneg %p953_p2 }
 0x193   : > { %p959_p6 = pnand %p958_p8, %p954_p3 }
 0x195   : > { %962 = shalt.err (!%p959_p6)
}
 0x196   : > { %859 = dma.vmem_to_hbm [thread:$0]  (%p1063_p5), %s673_s16, 128, %s670_s22, %s659_s23  }
 0x197 PF: > { %p871_p9 = scmp.ge.s32.totalorder %s1001_s12, 2  ;;  %s684_s5 = sand.u32 1, %s989_s9  }
 0x198   : > { %p1231_p10 = scmp.ne.s32.totalorder %s1229_s20, 0  ;;  %s685_s6 = scalar_lea.sflag [#allocation4], %s684_s5 }
 0x19a   : > { %p866_p11 = pnand %p871_p9, %p1231_p10 }
 0x19c   : > { %p867_p12 = pneg %p866_p11 }
 0x19e   : > { %984 = dma.done.wait (%p867_p12), %s685_s6, 128  }
 0x19f   : > { %986 = vsyncadd (%p867_p12), %s685_s6, 4294967168  ;;  %p13_p13 = scmp.ge.s32.totalorder %s1050_s15, 4   ;;  %s1232_s9 = smov %s993_s10 }
 0x1a0   : > { %s1233_s10 = smov %s997_s11  ;;  %s1234_s11 = smov %s1061_s18 }
 0x1a1   : > { %s1235_s12 = smov %s1050_s15  ;;  %15 = sbr.rel (!%p13_p13) target bundleno = 4 (0x4), region = 68 }
 0x1a6   :  { %690 = vsyncpa [#allocation3], 1 }
 0x1a7   :  { %692 = vsyncpa [#allocation3 + $0x1], 1 }
 0x1a8   :  { %693 = vsyncpa [#allocation4], 1 }
 0x1a9   :  { %695 = vsyncpa [#allocation4 + $0x1], 1 }

</bundles_post_ra>
